<compile_context>
chip_gen: v7x
topology: tpu7x:2x2x1
jax: 0.10.0
libtpu: 0.0.40
codegen_flags: <defaults>
</compile_context>

<pallas_src>
import functools

import jax
import jax.numpy as jnp
from jax import lax
from jax.experimental import pallas as pl
from jax.experimental.pallas import tpu as pltpu


def mf_kernel(u_idx_ref, i_idx_ref, tab_ref, w_ref, out_ref, *, n_users):
    # u_idx_ref / i_idx_ref : VMEM int32 (1, tb)   -- lane-dense batch tile of indices
    # tab_ref               : VMEM f32 (2D, U+I)   -- block-diag stacked [u_tab^T ; i_tab^T]
    # w_ref                 : VMEM f32 (1, D)      -- Linear(D, 1, bias=False).weight
    # out_ref               : VMEM f32 (1, tb)     -- lane-dense output tile
    two_d, n_rows = tab_ref.shape
    d = two_d // 2
    tb = out_ref.shape[1]

    u_idx = u_idx_ref[...]                 # (1, tb)
    i_idx = i_idx_ref[...] + n_users       # (1, tb), shifted into the item block

    # Combined one-hot over the stacked table rows; batch stays on the lane axis.
    # Out-of-range indices match no row -> zero gathered embedding.
    row = lax.broadcasted_iota(jnp.int32, (n_rows, tb), 0)      # sublane iota
    u_hit = (row == u_idx) & (row < n_users)                    # (U+I, tb)
    i_hit = (row == i_idx) & (row >= n_users)                   # (U+I, tb)
    oh = (u_hit | i_hit).astype(tab_ref.dtype)                  # (U+I, tb)

    # Single fused MXU gather: (2D, U+I) @ (U+I, tb) -> (2D, tb)
    #   rows [:D] = user_emb[user_index].T , rows [D:] = item_emb[item_index].T
    g = jnp.dot(tab_ref[...], oh, preferred_element_type=jnp.float32)

    x = g[:d, :] * g[d:, :]                                     # (D, tb), VPU

    # Linear(D, 1, bias=False): (1, D) @ (D, tb) -> (1, tb) lane-dense output.
    out_ref[...] = jnp.dot(w_ref[...], x, preferred_element_type=jnp.float32)


def stack_embedding_tables(user_emb, item_emb):
    """Block-diagonal stacked, transposed tables: [[u^T, 0], [0, i^T]], shape (2D, U+I).

    Build this ONCE per parameter update, not per forward call.
    """
    U, D = user_emb.shape
    I, D2 = item_emb.shape
    assert D == D2
    tab = jnp.zeros((2 * D, U + I), user_emb.dtype)
    tab = tab.at[:D, :U].set(user_emb.T)
    tab = tab.at[D:, U:].set(item_emb.T)
    return tab


def mf_forward_padded(u_idx, i_idx, stacked_tab, weight, *, n_users, tb=128):
    """Fast path: u_idx / i_idx are pre-padded lane-dense int32 of shape (1, Bp),
    Bp a multiple of tb; stacked_tab is from stack_embedding_tables().
    Returns float32 (1, Bp).  On single-TC v5e/v6e prefer tb=256..512 for big B."""
    Bp = u_idx.shape[1]
    two_d, n_rows = stacked_tab.shape
    d = two_d // 2
    assert Bp % tb == 0 and weight.shape == (1, d)

    cost = pl.CostEstimate(
        flops=2 * two_d * n_rows * Bp + 3 * d * Bp,
        transcendentals=0,
        bytes_accessed=4 * (two_d * n_rows + d) + 4 * 2 * Bp + 4 * Bp,
    )

    return pl.pallas_call(
        functools.partial(mf_kernel, n_users=n_users),
        out_shape=jax.ShapeDtypeStruct((1, Bp), jnp.float32),
        grid_spec=pltpu.PrefetchScalarGridSpec(
            num_scalar_prefetch=0,
            grid=(Bp // tb,),
            in_specs=[
                pl.BlockSpec((1, tb), lambda i: (0, i)),          # user indices (lane-dense)
                pl.BlockSpec((1, tb), lambda i: (0, i)),          # item indices (lane-dense)
                pl.BlockSpec((two_d, n_rows), lambda i: (0, 0)),  # stacked tables (VMEM resident)
                pl.BlockSpec((1, d), lambda i: (0, 0)),           # linear weight
            ],
            out_specs=pl.BlockSpec((1, tb), lambda i: (0, i)),
        ),
        compiler_params=pltpu.CompilerParams(
            # Disjoint output tiles -> shard batch tiles across TCs on v7x.
            dimension_semantics=("parallel",),
        ),
        cost_estimate=cost,
    )(u_idx, i_idx, stacked_tab, weight)


def mf_forward(user_index, item_index, user_emb, item_emb, weight, *, tb=128):
    """Convenience wrapper (demo).  In training/serving, do the padding and the
    table stacking outside the per-step hot path and call mf_forward_padded."""
    B = user_index.shape[0]
    U, _ = user_emb.shape
    Bp = ((B + tb - 1) // tb) * tb
    u_idx = jnp.zeros((1, Bp), jnp.int32).at[0, :B].set(user_index.astype(jnp.int32))
    i_idx = jnp.zeros((1, Bp), jnp.int32).at[0, :B].set(item_index.astype(jnp.int32))
    stacked = stack_embedding_tables(user_emb, item_emb)
    out = mf_forward_padded(u_idx, i_idx, stacked, weight, n_users=U, tb=tb)
    return out[0, :B]  # drop batch padding; matches .squeeze(dim=1) -> (B,)


if __name__ == "__main__":
    # Synthetic shapes: user_num=32, item_num=48, embedding_dim=32, batch=16.
    user_num, item_num, embedding_dim, batch = 32, 48, 32, 16

    key = jax.random.PRNGKey(0)
    k_u, k_i, k_w, k_ui, k_ii = jax.random.split(key, 5)

    # nn.Embedding default init: N(0, 1)
    user_emb = jax.random.normal(k_u, (user_num, embedding_dim), jnp.float32)
    item_emb = jax.random.normal(k_i, (item_num, embedding_dim), jnp.float32)
    # nn.Linear(D, 1, bias=False) default init: U(-1/sqrt(D), 1/sqrt(D)), shape (1, D)
    bound = 1.0 / (embedding_dim ** 0.5)
    weight = jax.random.uniform(
        k_w, (1, embedding_dim), jnp.float32, minval=-bound, maxval=bound
    )

    user_index = jax.random.randint(k_ui, (batch,), 0, user_num, jnp.int32)
    item_index = jax.random.randint(k_ii, (batch,), 0, item_num, jnp.int32)

    out = mf_forward(user_index, item_index, user_emb, item_emb, weight)
    out = jax.block_until_ready(out)

    # Pure-JAX reference of the PyTorch forward.
    ref = jnp.sum(user_emb[user_index] * item_emb[item_index] * weight[0], axis=1)
    assert out.shape == (batch,)
    assert jnp.allclose(out, ref, atol=1e-4, rtol=1e-4), "mismatch vs reference"

    print("KERNEL_OK")
</pallas_src>

<mosaic_0001>
module attributes {stable_mosaic.version = 11 : i64} {
  func.func @mf_kernel(%arg0: i32, %arg1: memref<1x128xi32, #tpu.memory_space<vmem>>, %arg2: memref<1x128xi32, #tpu.memory_space<vmem>>, %arg3: memref<64x80xf32, #tpu.memory_space<vmem>>, %arg4: memref<1x32xf32, #tpu.memory_space<vmem>>, %arg5: memref<1x128xf32, #tpu.memory_space<vmem>>) attributes {dimension_semantics = [#tpu.dimension_semantics<parallel>], iteration_bounds = array<i64: 1>, scalar_prefetch = 0 : i64, scratch_operands = 0 : i64, tpu.core_type = #tpu.core_type<tc>, window_params = [{transform_indices = @transform_0, window_bounds = array<i64: 1, 128>}, {transform_indices = @transform_1, window_bounds = array<i64: 1, 128>}, {pipeline_mode = #tpu.pipeline_mode<synchronous>, transform_indices = @transform_2, window_bounds = array<i64: 64, 80>}, {pipeline_mode = #tpu.pipeline_mode<synchronous>, transform_indices = @transform_3, window_bounds = array<i64: 1, 32>}, {transform_indices = @transform_4, window_bounds = array<i64: 1, 128>}]} {
    %c0 = arith.constant 0 : index
    %c0_0 = arith.constant 0 : index
    %0 = vector.load %arg1[%c0, %c0_0] : memref<1x128xi32, #tpu.memory_space<vmem>>, vector<1x128xi32>
    %c0_1 = arith.constant 0 : index
    %c0_2 = arith.constant 0 : index
    %1 = vector.load %arg2[%c0_1, %c0_2] : memref<1x128xi32, #tpu.memory_space<vmem>>, vector<1x128xi32>
    %c32_i32 = arith.constant 32 : i32
    %2 = vector.broadcast %c32_i32 : i32 to vector<1x128xi32>
    %3 = arith.addi %1, %2 : vector<1x128xi32>
    %4 = tpu.iota {dimensions = array<i32: 0>} : vector<80x128xi32>
    %5 = vector.broadcast %0 : vector<1x128xi32> to vector<80x128xi32>
    %6 = arith.cmpi eq, %4, %5 : vector<80x128xi32>
    %c32_i32_3 = arith.constant 32 : i32
    %7 = vector.broadcast %c32_i32_3 : i32 to vector<80x128xi32>
    %8 = arith.cmpi slt, %4, %7 : vector<80x128xi32>
    %9 = arith.andi %6, %8 : vector<80x128xi1>
    %10 = vector.broadcast %3 : vector<1x128xi32> to vector<80x128xi32>
    %11 = arith.cmpi eq, %4, %10 : vector<80x128xi32>
    %c32_i32_4 = arith.constant 32 : i32
    %12 = vector.broadcast %c32_i32_4 : i32 to vector<80x128xi32>
    %13 = arith.cmpi sge, %4, %12 : vector<80x128xi32>
    %14 = arith.andi %11, %13 : vector<80x128xi1>
    %15 = arith.ori %9, %14 : vector<80x128xi1>
    %16 = arith.extui %15 : vector<80x128xi1> to vector<80x128xi32>
    %17 = arith.sitofp %16 : vector<80x128xi32> to vector<80x128xf32>
    %c0_5 = arith.constant 0 : index
    %c0_6 = arith.constant 0 : index
    %18 = vector.load %arg3[%c0_5, %c0_6] : memref<64x80xf32, #tpu.memory_space<vmem>>, vector<64x80xf32>
    %cst = arith.constant dense<0.000000e+00> : vector<64x128xf32>
    %19 = tpu.matmul %18, %17, %cst {dimension_numbers = #tpu.dot_dimension_numbers<[1], [0], [0], [1], [0, 0, 1, 1], [], []>} : vector<64x80xf32>, vector<80x128xf32>, vector<64x128xf32> -> vector<64x128xf32>
    %20 = vector.extract_strided_slice %19 {offsets = [0, 0], sizes = [32, 128], strides = [1, 1]} : vector<64x128xf32> to vector<32x128xf32>
    %21 = vector.extract_strided_slice %19 {offsets = [32, 0], sizes = [32, 128], strides = [1, 1]} : vector<64x128xf32> to vector<32x128xf32>
    %22 = arith.mulf %20, %21 : vector<32x128xf32>
    %c0_7 = arith.constant 0 : index
    %c0_8 = arith.constant 0 : index
    %23 = vector.load %arg4[%c0_7, %c0_8] : memref<1x32xf32, #tpu.memory_space<vmem>>, vector<1x32xf32>
    %cst_9 = arith.constant dense<0.000000e+00> : vector<1x128xf32>
    %24 = tpu.matmul %23, %22, %cst_9 {dimension_numbers = #tpu.dot_dimension_numbers<[1], [0], [0], [1], [0, 0, 1, 1], [], []>} : vector<1x32xf32>, vector<32x128xf32>, vector<1x128xf32> -> vector<1x128xf32>
    %c0_10 = arith.constant 0 : index
    %c0_11 = arith.constant 0 : index
    %25 = vector.load %arg5[%c0_10, %c0_11] : memref<1x128xf32, #tpu.memory_space<vmem>>, vector<1x128xf32>
    tpu.vector_store %arg5[%c0_10, %c0_11], %24 {strides = array<i32>} : memref<1x128xf32, #tpu.memory_space<vmem>>, vector<1x128xf32>,
    return
  }
  func.func @transform_0(%arg0: i32) -> (i32, i32) {
    %c0_i32 = arith.constant 0 : i32
    %c0_i32_0 = arith.constant 0 : i32
    return %c0_i32, %arg0 : i32, i32
  }
  func.func @transform_1(%arg0: i32) -> (i32, i32) {
    %c0_i32 = arith.constant 0 : i32
    %c0_i32_0 = arith.constant 0 : i32
    return %c0_i32, %arg0 : i32, i32
  }
  func.func @transform_2(%arg0: i32) -> (i32, i32) {
    %c0_i32 = arith.constant 0 : i32
    %c0_i32_0 = arith.constant 0 : i32
    %c0_i32_1 = arith.constant 0 : i32
    return %c0_i32, %c0_i32_0 : i32, i32
  }
  func.func @transform_3(%arg0: i32) -> (i32, i32) {
    %c0_i32 = arith.constant 0 : i32
    %c0_i32_0 = arith.constant 0 : i32
    %c0_i32_1 = arith.constant 0 : i32
    return %c0_i32, %c0_i32_0 : i32, i32
  }
  func.func @transform_4(%arg0: i32) -> (i32, i32) {
    %c0_i32 = arith.constant 0 : i32
    %c0_i32_0 = arith.constant 0 : i32
    return %c0_i32, %arg0 : i32, i32
  }
}

</mosaic_0001>

<bundles_post_ra>
// kernel: tpu_custom_call.1
= control target key start
LH: loop header
LB: loop body
LE: loop exit
PB: predicated region body
PF: predicated region fallthrough
CT: control target
= control target key end

     0   :  { %9 = vsyncpa [#allocation3], 0  ;;  %s684_s0 = inlined_call_operand.hbm [shape: s32[1,128], index: 0, kind: input, shape index: {}]   ;;  %s685_s1 = inlined_call_operand.vmem [shape: s32[1,128], index: 1, kind: input, shape index: {}]   ;;  %s686_s2 = inlined_call_operand.hbm [shape: f32[64,80], index: 2, kind: input, shape index: {}]   ;;  %s687_s3 = inlined_call_operand.vmem [shape: f32[1,32], index: 3, kind: input, shape index: {}]   ;;  %s688_s4 = inlined_call_operand.hbm [shape: f32[1,128], index: 4, kind: output, shape index: {}]  }
   0x1   :  { %10 = vsyncpa [#allocation6], 0 }
   0x2   :  { %11 = vsyncpa [#allocation4], 0  ;;  %s593_s15 = smov [#allocation2]   ;;  %s594_s17 = smov [#allocation5]  }
   0x3   :  { %s18_s16 = sshll.u32 %s593_s15, 4  ;;  %s29_s18 = sshll.u32 %s594_s17, 4  ;;  %s19_s16 = int_to_ptr.vmem [resolvable:$true] %s18_s16  ;;  %s627_s18 = int_to_ptr.vmem [resolvable:$true] %s29_s18 }
   0x4   :  { %s521_s21 = scalar_lea.hbm %s684_s0, 16 }
   0x5   :  { %p522_p0 = scmp.ne.s32.totalorder %s684_s0, %s521_s21  ;;  %p525_p1 = scmp.lt.u32.totalorder %s521_s21, %s684_s0 }
   0x7   :  { %p527_p2 = pnand %p525_p1, %p522_p0 }
   0x9   :  { %530 = shalt.err (!%p527_p2)
}
   0xa   :  { %s531_s26 = scalar_lea.vmem %s19_s16, 16  ;;  %s535_s27 = scalar_lea.vmem %s19_s16, 32 }
   0xb   :  { %p532_p3 = scmp.ne.s32.totalorder %s19_s16, %s531_s26  ;;  %p536_p4 = scmp.lt.s32.totalorder %s19_s16, %s19_s16 }
   0xc   :  { %p537_p5 = scmp.lt.s32.totalorder %s535_s27, %s531_s26 }
   0xe   :  { %p538_p6 = por %p537_p5, %p536_p4 }
  0x10   :  { %p539_p7 = pnand %p538_p6, %p532_p3 }
  0x12   :  { %542 = shalt.err (!%p539_p7)
}
  0x13   :  { %21 = dma.hbm_to_vmem [thread:$0]  %s684_s0, 16, %s19_s16, [#allocation3]  }
  0x14   :  { %s543_s6 = scalar_lea.hbm %s686_s2, 1024 }
  0x15   :  { %p544_p8 = scmp.ne.s32.totalorder %s686_s2, %s543_s6  ;;  %p547_p9 = scmp.lt.u32.totalorder %s543_s6, %s686_s2 }
  0x17   :  { %p549_p10 = pnand %p547_p9, %p544_p8 }
  0x19   :  { %552 = shalt.err (!%p549_p10)
}
  0x1a   :  { %s553_s11 = scalar_lea.vmem %s627_s18, 1024  ;;  %p558_p12 = scmp.lt.s32.totalorder %s627_s18, %s627_s18 }
  0x1b   :  { %p554_p11 = scmp.ne.s32.totalorder %s627_s18, %s553_s11  ;;  %p559_p13 = scmp.lt.s32.totalorder %s553_s11, %s553_s11 }
  0x1d   :  { %p560_p0 = por %p559_p13, %p558_p12 }
  0x1f   :  { %p561_p1 = pnand %p560_p0, %p554_p11 }
  0x21   :  { %564 = shalt.err (!%p561_p1)
}
  0x22   :  { %s595_s0 = smov 128   ;;  %s596_s12 = smov 8  }
  0x23   :  { %35 = dma.hbm_to_vmem [thread:$0]  %s686_s2, 1024, %s627_s18, [#allocation6], %s595_s0, %s595_s0, %s596_s12  }
  0x24   :  { %587 = dma.done.wait [#allocation3], 16  }
  0x25   :  { %588 = vsyncadd [#allocation3], 4294967280 }
  0x26   :  { %589 = dma.done.wait [#allocation6], 1024  }
  0x27   :  { %590 = vsyncadd [#allocation6], 4294966272  ;;  %v47_v0 = vlaneseq  ;;  %vm164_vm0 = vcmask 654336   ;;  %v390_v5 = vld [vmem:[#allocation2] ss:$0 sm:$0xff]  ;;  %v156_v8 = vld [vmem:[#allocation5] sm:$0xff] }
  0x28   :  { %v45_v6 = vld [vmem:[%s685_s1] sm:$0x1]  ;;  %463 = vmatprep.mubr.msk.f32.mxu0 %vm164_vm0, %v156_v8  ;;  %v597_v12 = vmov 1.0|1.0   ;;  %v157_v18 = vld [vmem:[#allocation5 + $0x8] sm:$0xff]  ;;  %v158_v19 = vld [vmem:[#allocation5 + $0x10] sm:$0xff] }
  0x29   :  { %v48_v1 = vshrl.u32 %v47_v0, 7  ;;  %v46_v9 = vadd.s32 32, %v45_v6  ;;  %v159_v20 = vld [vmem:[#allocation5 + $0x18] sm:$0xff]  ;;  %v160_v21 = vld [vmem:[#allocation5 + $0x20] sm:$0xff]  ;;  %v161_v22 = vld [vmem:[#allocation5 + $0x28] sm:$0xff]  ;;  %v598_v25 = vmov 0.0|0.0  }
  0x2a   :  { %v162_v23 = vld [vmem:[#allocation5 + $0x30] sm:$0xff]  ;;  %v163_v24 = vld [vmem:[#allocation5 + $0x38] sm:$0xff]  ;;  %506 = vmatprep.subr.bf16.mxu1 %v598_v25  ;;  %v600_v26 = vmov 0.0   ;;  %s601_s17 = smov [#allocation7]  }
  0x2b   :  { %v49_v2 = vadd.s32 8, %v48_v1  ;;  %v50_v3 = vadd.s32 16, %v48_v1  ;;  %v51_v4 = vadd.s32 24, %v48_v1  ;;  %v94_v7 = vsub.s32 0, %v48_v1  ;;  %v298_v41 = vld [vmem:[%s687_s3] sm:$0x1] }
  0x2c   :  { %vm62_vm1 = vcmp.eq.s32.totalorder %v48_v1, %v390_v5  ;;  %v52_v10 = vadd.s32 32, %v48_v1  ;;  %v53_v11 = vadd.s32 40, %v48_v1  ;;  %v54_v13 = vadd.s32 48, %v48_v1  ;;  %s380_s18 = sshll.u32 %s601_s17, 4  ;;  %s381_s18 = int_to_ptr.vmem [resolvable:$true] %s380_s18 }
  0x2d   :  { %vm63_vm2 = vcmp.eq.s32.totalorder %v49_v2, %v390_v5  ;;  %vm64_vm3 = vcmp.eq.s32.totalorder %v50_v3, %v390_v5  ;;  %vm65_vm4 = vcmp.eq.s32.totalorder %v51_v4, %v390_v5  ;;  %v55_v14 = vadd.s32 56, %v48_v1  ;;  %s565_s19 = scalar_lea.vmem %s381_s18, 16  ;;  %s569_s20 = scalar_lea.vmem %s381_s18, 32 }
  0x2e   :  { %vm486_vm5 = vmpackc.low %vm63_vm2, %vm62_vm1  ;;  %v95_v15 = vrot.slane %v46_v9, %v94_v7  ;;  %v56_v16 = vadd.s32 64, %v48_v1  ;;  %v57_v17 = vadd.s32 72, %v48_v1  ;;  %vm599_vm1 = vmmov 0   ;;  %p566_p2 = scmp.ne.s32.totalorder %s381_s18, %s565_s19  ;;  %p570_p3 = scmp.lt.s32.totalorder %s381_s18, %s381_s18 }
  0x2f   :  { %487 = vmatprep.subr.msk.bf16.mxu0 %vm486_vm5, %v597_v12  ;;  %vm490_vm6 = vmpackc.low %vm65_vm4, %vm64_vm3  ;;  %483 = vmatprep.mubr.msk.f32.mxu1 %vm599_vm1, %v600_v26  ;;  %p571_p4 = scmp.lt.s32.totalorder %s569_s20, %s565_s19 }
  0x30   :  { %489 = vmatpush3.bf16.msk.msra.mxu0 %vm486_vm5, %v597_v12  ;;  %vm100_vm7 = vcmp.eq.s32.totalorder %v52_v10, %v95_v15  ;;  %vm101_vm8 = vcmp.eq.s32.totalorder %v53_v11, %v95_v15  ;;  %vm102_vm10 = vcmp.eq.s32.totalorder %v54_v13, %v95_v15  ;;  %vm103_vm11 = vcmp.eq.s32.totalorder %v55_v14, %v95_v15 }
  0x31   :  { %491 = vmatprep.subr.msk.bf16.mxu0 %vm490_vm6, %v597_v12  ;;  %vm494_vm9 = vmpackc.low %vm101_vm8, %vm100_vm7  ;;  %vm104_vm13 = vcmp.eq.s32.totalorder %v56_v16, %v95_v15  ;;  %vm105_vm14 = vcmp.eq.s32.totalorder %v57_v17, %v95_v15  ;;  %p572_p5 = por %p571_p4, %p570_p3 }
  0x32   :  { %vm498_vm12 = vmpackc.low %vm103_vm11, %vm102_vm10 }
  0x33   :  { %vm502_vm15 = vmpackc.low %vm105_vm14, %vm104_vm13  ;;  %p573_p6 = pnand %p572_p5, %p566_p2 }
  0x34   :  { %493 = vmatpush3.bf16.msk.msra.mxu0 %vm490_vm6, %v597_v12 }
  0x35   :  { %495 = vmatprep.subr.msk.bf16.mxu0 %vm494_vm9, %v597_v12 }
  0x38   :  { %497 = vmatpush3.bf16.msk.msra.mxu0 %vm494_vm9, %v597_v12 }
  0x39   :  { %499 = vmatprep.subr.msk.bf16.mxu0 %vm498_vm12, %v597_v12 }
  0x3c   :  { %501 = vmatpush3.bf16.msk.msra.mxu0 %vm498_vm12, %v597_v12 }
  0x3d   :  { %503 = vmatprep.subr.msk.bf16.mxu0 %vm502_vm15, %v597_v12 }
  0x40   :  { %505 = vmatpush3.bf16.msk.msra.mxu0 %vm502_vm15, %v597_v12 }
  0x43   :  { %464 = vmatmul.mubr.msk.f32.vlgmr.msra.gmra.mrb[0].mxu0 %vm164_vm0, %v157_v18 }
  0x44   :  { %466 = vmatprep.mubr.msk.f32.mxu0 %vm164_vm0, %v158_v19 }
  0x47   :  { %467 = vmatmul.mubr.msk.f32.gmra.mrb[2].mxu0 %vm164_vm0, %v159_v20 }
  0x48   :  { %469 = vmatprep.mubr.msk.f32.mxu0 %vm164_vm0, %v160_v21 }
  0x4b   :  { %470 = vmatmul.mubr.msk.f32.gmra.mrb[4].mxu0 %vm164_vm0, %v161_v22 }
  0x4c   :  { %472 = vmatprep.mubr.msk.f32.mxu0 %vm164_vm0, %v162_v23 }
  0x4f   :  { %473 = vmatmul.mubr.msk.f32.gmra.mrb[6].mxu0 %vm164_vm0, %v163_v24  ;;  %vm299_vm0 = vcmask 261120  }
 0x116   :  { %v465_v27 = vpop.f32.mrb[0].mxu0 }
 0x117   :  { %v255_v28 = vpop.f32.mrb[1].mxu0 }
 0x11a   :  { %v468_v29 = vpop.f32.mrb[2].mxu0 }
 0x11b   :  { %v265_v30 = vpop.f32.mrb[3].mxu0 }
 0x11e   :  { %v471_v31 = vpop.f32.mrb[4].mxu0 }
 0x11f   :  { %v295_v32 = vmul.f32 %v471_v31, %v465_v27  ;;  %v275_v33 = vpop.f32.mrb[5].mxu0 }
 0x120   :  { %v294_v34 = vmul.f32 %v275_v33, %v255_v28 }
 0x122   :  { %v474_v35 = vpop.f32.mrb[6].mxu0  ;;  %v507_v36 = vpack.c.bf16 %v295_v32, %v294_v34 }
 0x123   :  { %v297_v37 = vmul.f32 %v474_v35, %v468_v29  ;;  %v285_v38 = vpop.f32.mrb[7].mxu0 }
 0x124   :  { %v296_v39 = vmul.f32 %v285_v38, %v265_v30  ;;  %508 = vmatpush3.bf16.msra.mxu1 %v507_v36 }
 0x125   :  { %509 = vmatprep.subr.bf16.mxu1 %v598_v25 }
 0x126   :  { %v510_v40 = vpack.c.bf16 %v297_v37, %v296_v39 }
 0x128   :  { %511 = vmatpush3.bf16.msra.mxu1 %v510_v40 }
 0x12b   :  { %484 = vmatmul.mubr.msk.f32.vlgmr.msra.gmra.mrb[0].mxu1 %vm299_vm0, %v298_v41 }
 0x1fe   :  { %v369_v42 = vpop.f32.mrb[0].mxu1 }
 0x1ff   :  { %373 = vst [vmem:[#allocation7] sm:$0x1] %v369_v42  ;;  %v485_v43 = vpop.f32.mrb[1].mxu1 }
 0x200   :  { %576 = shalt.err (!%p573_p6)
}
 0x201   :  { %s577_s3 = scalar_lea.hbm %s688_s4, 16 }
 0x202   :  { %p578_p7 = scmp.ne.s32.totalorder %s688_s4, %s577_s3  ;;  %p581_p8 = scmp.lt.u32.totalorder %s577_s3, %s688_s4 }
 0x204   :  { %p583_p9 = pnand %p581_p8, %p578_p7 }
 0x206   :  { %586 = shalt.err (!%p583_p9)
}
 0x207   :  { %383 = dma.vmem_to_hbm [thread:$0]  %s381_s18, 16, %s688_s4, [#allocation4]  }
 0x208   :  { %591 = dma.done.wait [#allocation4], 16  }
 0x209   :  { %592 = vsyncadd [#allocation4], 4294967280 }
 0x20a   :  { %387 = vsyncpa [#allocation3], 1 }
 0x20b   :  { %388 = vsyncpa [#allocation6], 1 }
 0x20c   :  { %389 = vsyncpa [#allocation4], 1 }

</bundles_post_ra>
